<compile_context>
chip_gen: v7x
topology: tpu7x:2x2x1
jax: 0.10.0
libtpu: 0.0.40
codegen_flags: <defaults>
</compile_context>

<pallas_src>
import functools

import jax
import jax.numpy as jnp
from jax.experimental import pallas as pl
from jax.experimental.pallas import tpu as pltpu

EPS = 1e-5


def _apply_layers(h, pairs):
    """Chain of (1x1-conv matmul) -> folded-BN affine -> relu.

    pairs: sequence of (w_ref, aff_ref) with w (C_in, C_out) bf16 and
    aff (2, C_out) f32, rows = (scale, shift)."""
    for w_ref, aff_ref in pairs:
        y = jnp.dot(h.astype(jnp.bfloat16), w_ref[...],
                    preferred_element_type=jnp.float32)
        aff = aff_ref[...]
        h = jnp.maximum(y * aff[0:1, :] + aff[1:2, :], 0.0)
    return h


def _stats_kernel(total_t, n_prev, *refs):
    """Accumulate per-channel sum / sum-of-squares of the pre-BN activation of
    layer (n_prev + 1) across the T grid, then finalize into (scale, shift).

    refs = x_ref, (w, aff) * n_prev, w_cur, gamma, beta, stat_out."""
    x_ref = refs[0]
    pairs = [(refs[1 + 2 * i], refs[2 + 2 * i]) for i in range(n_prev)]
    w_cur, g_ref, be_ref, stat_ref = refs[1 + 2 * n_prev:]

    t = pl.program_id(0)

    @pl.when(t == 0)
    def _init():
        stat_ref[...] = jnp.zeros_like(stat_ref)

    h = _apply_layers(x_ref[...], pairs)
    y = jnp.dot(h.astype(jnp.bfloat16), w_cur[...],
                preferred_element_type=jnp.float32)
    stat_ref[0:1, :] += jnp.sum(y, axis=0, keepdims=True)
    stat_ref[1:2, :] += jnp.sum(y * y, axis=0, keepdims=True)

    @pl.when(t == pl.num_programs(0) - 1)
    def _finalize():
        inv_t = 1.0 / float(total_t)
        mean = stat_ref[0:1, :] * inv_t
        var = jnp.maximum(stat_ref[1:2, :] * inv_t - mean * mean, 0.0)
        scale = g_ref[...] * jax.lax.rsqrt(var + EPS)
        shift = be_ref[...] - mean * scale
        stat_ref[0:1, :] = scale
        stat_ref[1:2, :] = shift


def _apply_kernel(*refs):
    """Final sweep: recompute the 3-layer chain with folded BN, write output."""
    x_ref, out_ref = refs[0], refs[-1]
    pairs = [(refs[1 + 2 * i], refs[2 + 2 * i]) for i in range(3)]
    out_ref[...] = _apply_layers(x_ref[...], pairs).astype(out_ref.dtype)


def _pick_block_t(T):
    for cand in (512, 256, 128, 64, 32, 16, 8):
        if T % cand == 0:
            return cand
    return T


def init_params(key, feat_len, hidden=512):
    """Deterministic parameters matching the PyTorch module's shapes.

    Conv1d weights (C_out, C_in, 1) are stored pre-transposed as (C_in, C_out).
    Conv biases are kept (used by the f32 reference) even though the kernels
    drop them (cancelled by training-mode BN).  BN gamma=1, beta=0."""
    c_in = 2 * feat_len
    ks = jax.random.split(key, 6)

    def conv_w(k, cin, cout):
        bound = 1.0 / jnp.sqrt(cin)
        return jax.random.uniform(k, (cin, cout), jnp.float32, -bound, bound)

    def conv_b(k, cin, cout):
        bound = 1.0 / jnp.sqrt(cin)
        return jax.random.uniform(k, (1, cout), jnp.float32, -bound, bound)

    return {
        "w1": conv_w(ks[0], c_in, hidden),
        "b1": conv_b(ks[1], c_in, hidden),
        "g1": jnp.ones((1, hidden), jnp.float32),
        "be1": jnp.zeros((1, hidden), jnp.float32),
        "w2": conv_w(ks[2], hidden, hidden),
        "b2": conv_b(ks[3], hidden, hidden),
        "g2": jnp.ones((1, hidden), jnp.float32),
        "be2": jnp.zeros((1, hidden), jnp.float32),
        "w3": conv_w(ks[4], hidden, feat_len),
        "b3": conv_b(ks[5], hidden, feat_len),
        "g3": jnp.ones((1, feat_len), jnp.float32),
        "be3": jnp.zeros((1, feat_len), jnp.float32),
    }


def mlp3_forward(x, params, *, block_t=None):
    """x: (N, P, 2F) f32 -> (N, P, F) f32 (training-mode BatchNorm stats)."""
    N, P, c_in = x.shape
    hidden = params["w1"].shape[1]
    feat_len = params["w3"].shape[1]
    T = N * P
    x2 = x.reshape(T, c_in)

    if block_t is None:
        block_t = _pick_block_t(T)
    assert T % block_t == 0, "token count must be divisible by block_t"
    nt = T // block_t

    # Lane-dense padding of the narrow layer-3 channel dim (e.g. 32 -> 128).
    c_out = ((feat_len + 127) // 128) * 128

    w1 = params["w1"].astype(jnp.bfloat16)
    w2 = params["w2"].astype(jnp.bfloat16)
    w3 = jnp.zeros((hidden, c_out), jnp.float32).at[:, :feat_len].set(
        params["w3"]).astype(jnp.bfloat16)
    g1, be1 = params["g1"], params["be1"]
    g2, be2 = params["g2"], params["be2"]
    g3 = jnp.zeros((1, c_out), jnp.float32).at[:, :feat_len].set(params["g3"])
    be3 = jnp.zeros((1, c_out), jnp.float32).at[:, :feat_len].set(params["be3"])
    # NOTE: conv biases b1/b2/b3 are intentionally NOT used in the kernels:
    # training-mode BatchNorm subtracts the batch mean, which cancels them.

    x_spec = pl.BlockSpec((block_t, c_in), lambda t: (t, 0))

    def const_spec(arr):
        # Parameter stays VMEM-resident across all T steps (block index fixed).
        return pl.BlockSpec(arr.shape, lambda t: (0, 0))

    # 48 MiB scoped VMEM: leaves headroom on v7x (64 MiB physical), plenty on
    # v5e/v6e for these tile sizes.
    cp_stats = pltpu.CompilerParams(dimension_semantics=("arbitrary",),
                                    vmem_limit_bytes=48 << 20)
    cp_apply = pltpu.CompilerParams(dimension_semantics=("parallel",),
                                    vmem_limit_bytes=48 << 20)

    def stats_call(n_prev, c, args):
        return pl.pallas_call(
            functools.partial(_stats_kernel, T, n_prev),
            grid=(nt,),
            in_specs=[x_spec] + [const_spec(a) for a in args],
            out_specs=pl.BlockSpec((2, c), lambda t: (0, 0)),
            out_shape=jax.ShapeDtypeStruct((2, c), jnp.float32),
            compiler_params=cp_stats,
        )(x2, *args)

    aff1 = stats_call(0, hidden, (w1, g1, be1))
    aff2 = stats_call(1, hidden, (w1, aff1, w2, g2, be2))
    aff3 = stats_call(2, c_out, (w1, aff1, w2, aff2, w3, g3, be3))

    apply_args = (w1, aff1, w2, aff2, w3, aff3)
    out_pad = pl.pallas_call(
        _apply_kernel,
        grid=(nt,),
        in_specs=[x_spec] + [const_spec(a) for a in apply_args],
        out_specs=pl.BlockSpec((block_t, c_out), lambda t: (t, 0)),
        out_shape=jax.ShapeDtypeStruct((T, c_out), jnp.float32),
        compiler_params=cp_apply,
    )(x2, *apply_args)

    return out_pad[:, :feat_len].reshape(N, P, feat_len)


def mlp3_reference(x, params):
    """Pure-JAX f32 reference with the exact module math (incl. conv biases)."""
    N, P, _ = x.shape
    h = x.reshape(N * P, -1)

    def layer(h, w, b, g, be):
        y = h @ w + b
        mean = jnp.mean(y, axis=0, keepdims=True)
        var = jnp.mean(jnp.square(y - mean), axis=0, keepdims=True)
        return jnp.maximum((y - mean) * jax.lax.rsqrt(var + EPS) * g + be, 0.0)

    h = layer(h, params["w1"], params["b1"], params["g1"], params["be1"])
    h = layer(h, params["w2"], params["b2"], params["g2"], params["be2"])
    h = layer(h, params["w3"], params["b3"], params["g3"], params["be3"])
    return h.reshape(N, P, -1)


def mlp3_reference_bf16(x, params):
    """Reference matching the kernel numerics (bf16 matmuls, folded BN, no bias)."""
    N, P, _ = x.shape
    h = x.reshape(N * P, -1)

    def layer(h, w, g, be):
        y = jnp.dot(h.astype(jnp.bfloat16), w.astype(jnp.bfloat16),
                    preferred_element_type=jnp.float32)
        mean = jnp.mean(y, axis=0, keepdims=True)
        var = jnp.maximum(jnp.mean(y * y, axis=0, keepdims=True) - mean * mean, 0.0)
        scale = g * jax.lax.rsqrt(var + EPS)
        return jnp.maximum(y * scale + (be - mean * scale), 0.0)

    h = layer(h, params["w1"], params["g1"], params["be1"])
    h = layer(h, params["w2"], params["g2"], params["be2"])
    h = layer(h, params["w3"], params["g3"], params["be3"])
    return h.reshape(N, P, -1)


if __name__ == "__main__":
    feat_len = 32  # F
    key = jax.random.PRNGKey(0)
    k_x1, k_x2, k_p = jax.random.split(key, 3)
    params = init_params(k_p, feat_len)

    # Small shape (single T tile): input (B*P, P, 2F) with B=2, P=8 -> T=128.
    x_small = jax.random.normal(k_x1, (2 * 8, 8, 2 * feat_len), jnp.float32)
    # Slightly larger shape exercising multi-tile BN accumulation:
    # B=4, P=16 -> T=1024, block_t=256 -> 4 grid steps.
    x_big = jax.random.normal(k_x2, (4 * 16, 16, 2 * feat_len), jnp.float32)

    for x, bt in ((x_small, None), (x_big, 256)):
        out = mlp3_forward(x, params, block_t=bt)
        jax.block_until_ready(out)
        assert out.shape == (x.shape[0], x.shape[1], feat_len)

        # Tight check vs a reference that uses the same (bf16-matmul) numerics.
        ref_bf16 = mlp3_reference_bf16(x, params)
        assert jnp.allclose(out, ref_bf16, atol=2e-3, rtol=2e-3), \
            "mismatch vs bf16-matched reference"

        # Loose check vs the exact f32 module math (bf16 MXU rounding only).
        ref_f32 = mlp3_reference(x, params)
        assert jnp.allclose(out, ref_f32, atol=8e-2, rtol=5e-2), \
            "mismatch vs f32 module reference"

    print("KERNEL_OK")
</pallas_src>

<mosaic_0001>
module attributes {stable_mosaic.version = 11 : i64} {
  func.func @_stats_kernel(%arg0: i32, %arg1: memref<128x64xf32, #tpu.memory_space<vmem>>, %arg2: memref<64x512xbf16, #tpu.memory_space<vmem>>, %arg3: memref<1x512xf32, #tpu.memory_space<vmem>>, %arg4: memref<1x512xf32, #tpu.memory_space<vmem>>, %arg5: memref<2x512xf32, #tpu.memory_space<vmem>>) attributes {dimension_semantics = [#tpu.dimension_semantics<arbitrary>], iteration_bounds = array<i64: 1>, scalar_prefetch = 0 : i64, scratch_operands = 0 : i64, tpu.core_type = #tpu.core_type<tc>, window_params = [{transform_indices = @transform_0, window_bounds = array<i64: 128, 64>}, {pipeline_mode = #tpu.pipeline_mode<synchronous>, transform_indices = @transform_1, window_bounds = array<i64: 64, 512>}, {pipeline_mode = #tpu.pipeline_mode<synchronous>, transform_indices = @transform_2, window_bounds = array<i64: 1, 512>}, {pipeline_mode = #tpu.pipeline_mode<synchronous>, transform_indices = @transform_3, window_bounds = array<i64: 1, 512>}, {pipeline_mode = #tpu.pipeline_mode<synchronous>, transform_indices = @transform_4, window_bounds = array<i64: 2, 512>}]} {
    %c0_i32 = arith.constant 0 : i32
    %0 = arith.cmpi eq, %arg0, %c0_i32 : i32
    %1 = arith.extui %0 : i1 to i32
    %c0_i32_0 = arith.constant 0 : i32
    %2 = arith.cmpi ne, %1, %c0_i32_0 : i32
    scf.if %2 {
      %cst_15 = arith.constant 0.000000e+00 : f32
      %21 = vector.broadcast %cst_15 : f32 to vector<2x512xf32>
      %c0_16 = arith.constant 0 : index
      %c0_17 = arith.constant 0 : index
      %22 = vector.load %arg5[%c0_16, %c0_17] : memref<2x512xf32, #tpu.memory_space<vmem>>, vector<2x512xf32>
      tpu.vector_store %arg5[%c0_16, %c0_17], %21 {strides = array<i32>} : memref<2x512xf32, #tpu.memory_space<vmem>>, vector<2x512xf32>,
    } else {
    }
    %c0 = arith.constant 0 : index
    %c0_1 = arith.constant 0 : index
    %3 = vector.load %arg1[%c0, %c0_1] : memref<128x64xf32, #tpu.memory_space<vmem>>, vector<128x64xf32>
    %4 = arith.truncf %3 : vector<128x64xf32> to vector<128x64xbf16>
    %c0_2 = arith.constant 0 : index
    %c0_3 = arith.constant 0 : index
    %5 = vector.load %arg2[%c0_2, %c0_3] : memref<64x512xbf16, #tpu.memory_space<vmem>>, vector<64x512xbf16>
    %cst = arith.constant dense<0.000000e+00> : vector<128x512xf32>
    %6 = tpu.matmul %4, %5, %cst {dimension_numbers = #tpu.dot_dimension_numbers<[1], [0], [0], [1], [0, 0, 1, 1], [], []>} : vector<128x64xbf16>, vector<64x512xbf16>, vector<128x512xf32> -> vector<128x512xf32>
    %c0_4 = arith.constant 0 : index
    %c0_5 = arith.constant 0 : index
    %7 = vector.load %arg5[%c0_4, %c0_5] : memref<2x512xf32, #tpu.memory_space<vmem>>, vector<1x512xf32>
    %cst_6 = arith.constant dense<0.000000e+00> : vector<512xf32>
    %8 = vector.multi_reduction <add>, %6, %cst_6 [0] : vector<128x512xf32> to vector<512xf32>
    %9 = vector.shape_cast %8 : vector<512xf32> to vector<1x512xf32>
    %10 = arith.addf %7, %9 : vector<1x512xf32>
    %c0_7 = arith.constant 0 : index
    %c0_8 = arith.constant 0 : index
    %11 = vector.load %arg5[%c0_7, %c0_8] : memref<2x512xf32, #tpu.memory_space<vmem>>, vector<1x512xf32>
    tpu.vector_store %arg5[%c0_7, %c0_8], %10 {strides = array<i32>} : memref<2x512xf32, #tpu.memory_space<vmem>>, vector<1x512xf32>,
    %c1 = arith.constant 1 : index
    %c0_9 = arith.constant 0 : index
    %12 = vector.load %arg5[%c1, %c0_9] : memref<2x512xf32, #tpu.memory_space<vmem>>, vector<1x512xf32>
    %13 = arith.mulf %6, %6 : vector<128x512xf32>
    %cst_10 = arith.constant dense<0.000000e+00> : vector<512xf32>
    %14 = vector.multi_reduction <add>, %13, %cst_10 [0] : vector<128x512xf32> to vector<512xf32>
    %15 = vector.shape_cast %14 : vector<512xf32> to vector<1x512xf32>
    %16 = arith.addf %12, %15 : vector<1x512xf32>
    %c1_11 = arith.constant 1 : index
    %c0_12 = arith.constant 0 : index
    %17 = vector.load %arg5[%c1_11, %c0_12] : memref<2x512xf32, #tpu.memory_space<vmem>>, vector<1x512xf32>
    tpu.vector_store %arg5[%c1_11, %c0_12], %16 {strides = array<i32>} : memref<2x512xf32, #tpu.memory_space<vmem>>, vector<1x512xf32>,
    %c0_i32_13 = arith.constant 0 : i32
    %18 = arith.cmpi eq, %arg0, %c0_i32_13 : i32
    %19 = arith.extui %18 : i1 to i32
    %c0_i32_14 = arith.constant 0 : i32
    %20 = arith.cmpi ne, %19, %c0_i32_14 : i32
    scf.if %20 {
      %c0_15 = arith.constant 0 : index
      %c0_16 = arith.constant 0 : index
      %21 = vector.load %arg5[%c0_15, %c0_16] : memref<2x512xf32, #tpu.memory_space<vmem>>, vector<1x512xf32>
      %cst_17 = arith.constant 7.812500e-03 : f32
      %22 = vector.broadcast %cst_17 : f32 to vector<1x512xf32>
      %23 = arith.mulf %21, %22 : vector<1x512xf32>
      %c1_18 = arith.constant 1 : index
      %c0_19 = arith.constant 0 : index
      %24 = vector.load %arg5[%c1_18, %c0_19] : memref<2x512xf32, #tpu.memory_space<vmem>>, vector<1x512xf32>
      %cst_20 = arith.constant 7.812500e-03 : f32
      %25 = vector.broadcast %cst_20 : f32 to vector<1x512xf32>
      %26 = arith.mulf %24, %25 : vector<1x512xf32>
      %27 = arith.mulf %23, %23 : vector<1x512xf32>
      %28 = arith.subf %26, %27 : vector<1x512xf32>
      %cst_21 = arith.constant 0.000000e+00 : f32
      %29 = vector.broadcast %cst_21 : f32 to vector<1x512xf32>
      %30 = arith.maximumf %28, %29 : vector<1x512xf32>
      %c0_22 = arith.constant 0 : index
      %c0_23 = arith.constant 0 : index
      %31 = vector.load %arg3[%c0_22, %c0_23] : memref<1x512xf32, #tpu.memory_space<vmem>>, vector<1x512xf32>
      %cst_24 = arith.constant 9.99999974E-6 : f32
      %32 = vector.broadcast %cst_24 : f32 to vector<1x512xf32>
      %33 = arith.addf %30, %32 : vector<1x512xf32>
      %34 = math.rsqrt %33 : vector<1x512xf32>
      %35 = arith.mulf %31, %34 : vector<1x512xf32>
      %c0_25 = arith.constant 0 : index
      %c0_26 = arith.constant 0 : index
      %36 = vector.load %arg4[%c0_25, %c0_26] : memref<1x512xf32, #tpu.memory_space<vmem>>, vector<1x512xf32>
      %37 = arith.mulf %23, %35 : vector<1x512xf32>
      %38 = arith.subf %36, %37 : vector<1x512xf32>
      %c0_27 = arith.constant 0 : index
      %c0_28 = arith.constant 0 : index
      %39 = vector.load %arg5[%c0_27, %c0_28] : memref<2x512xf32, #tpu.memory_space<vmem>>, vector<1x512xf32>
      tpu.vector_store %arg5[%c0_27, %c0_28], %35 {strides = array<i32>} : memref<2x512xf32, #tpu.memory_space<vmem>>, vector<1x512xf32>,
      %c1_29 = arith.constant 1 : index
      %c0_30 = arith.constant 0 : index
      %40 = vector.load %arg5[%c1_29, %c0_30] : memref<2x512xf32, #tpu.memory_space<vmem>>, vector<1x512xf32>
      tpu.vector_store %arg5[%c1_29, %c0_30], %38 {strides = array<i32>} : memref<2x512xf32, #tpu.memory_space<vmem>>, vector<1x512xf32>,
    } else {
    }
    return
  }
  func.func @transform_0(%arg0: i32) -> (i32, i32) {
    %c0_i32 = arith.constant 0 : i32
    %c0_i32_0 = arith.constant 0 : i32
    return %arg0, %c0_i32 : i32, i32
  }
  func.func @transform_1(%arg0: i32) -> (i32, i32) {
    %c0_i32 = arith.constant 0 : i32
    %c0_i32_0 = arith.constant 0 : i32
    %c0_i32_1 = arith.constant 0 : i32
    return %c0_i32, %c0_i32_0 : i32, i32
  }
  func.func @transform_2(%arg0: i32) -> (i32, i32) {
    %c0_i32 = arith.constant 0 : i32
    %c0_i32_0 = arith.constant 0 : i32
    %c0_i32_1 = arith.constant 0 : i32
    return %c0_i32, %c0_i32_0 : i32, i32
  }
  func.func @transform_3(%arg0: i32) -> (i32, i32) {
    %c0_i32 = arith.constant 0 : i32
    %c0_i32_0 = arith.constant 0 : i32
    %c0_i32_1 = arith.constant 0 : i32
    return %c0_i32, %c0_i32_0 : i32, i32
  }
  func.func @transform_4(%arg0: i32) -> (i32, i32) {
    %c0_i32 = arith.constant 0 : i32
    %c0_i32_0 = arith.constant 0 : i32
    %c0_i32_1 = arith.constant 0 : i32
    return %c0_i32, %c0_i32_0 : i32, i32
  }
}

</mosaic_0001>

<bundles_post_ra>
// kernel: tpu_custom_call.1
= control target key start
LH: loop header
LB: loop body
LE: loop exit
PB: predicated region body
PF: predicated region fallthrough
CT: control target
= control target key end

     0   :  { %v815_v2 = vmov 0   ;;  %vm144_vm0 = vcmask 523264   ;;  %s1012_s0 = inlined_call_operand.vmem [shape: f32[128,64], index: 0, kind: input, shape index: {}]   ;;  %s1013_s1 = inlined_call_operand.vmem [shape: bf16[64,512], index: 1, kind: input, shape index: {}]   ;;  %s1014_s2 = inlined_call_operand.vmem [shape: f32[1,512], index: 2, kind: input, shape index: {}]   ;;  %s1015_s3 = inlined_call_operand.vmem [shape: f32[1,512], index: 3, kind: input, shape index: {}]   ;;  %s1016_s4 = inlined_call_operand.hbm [shape: f32[2,512], index: 4, kind: output, shape index: {}]  }
   0x1   :  { %v765_v0 = vld [vmem:[%s1013_s1 + $0x4] ss:$16 sps:$4 sm:$0xff]   ;;  %v767_v1 = vld [vmem:[%s1013_s1 + $0xc] ss:$16 sps:$4 sm:$0xff]   ;;  %201 = vmatprep.mubr.bf16.mxu0 %v815_v2  ;;  %314 = vmatprep.mubr.bf16.mxu1 %v815_v2  ;;  %v769_v3 = vld [vmem:[%s1013_s1] ss:$16 sps:$4 sm:$0xff]  }
   0x2   :  { %169 = vmatprep.subr.bf16.mxu0 %v765_v0  ;;  %v770_v4 = vld [vmem:[%s1013_s1 + $0x8] ss:$16 sps:$4 sm:$0xff]   ;;  %282 = vmatprep.subr.bf16.mxu1 %v767_v1  ;;  %v771_v5 = vld [vmem:[%s1013_s1 + $0x24] ss:$16 sps:$4 sm:$0xff]   ;;  %v773_v6 = vld [vmem:[%s1013_s1 + $0x2c] ss:$16 sps:$4 sm:$0xff]  }
   0x3   :  { %170 = vmatpush1.bf16.msra.mxu0 %v769_v3  ;;  %283 = vmatpush1.bf16.msra.mxu1 %v770_v4  ;;  %v775_v7 = vld [vmem:[%s1013_s1 + $0x20] ss:$16 sps:$4 sm:$0xff]   ;;  %v776_v8 = vld [vmem:[%s1013_s1 + $0x28] ss:$16 sps:$4 sm:$0xff]   ;;  %v777_v9 = vld [vmem:[%s1013_s1 + $0x44] ss:$16 sps:$4 sm:$0xff]  }
   0x4   :  { %171 = vmatprep.subr.bf16.mxu0 %v771_v5  ;;  %284 = vmatprep.subr.bf16.mxu1 %v773_v6  ;;  %v779_v10 = vld [vmem:[%s1013_s1 + $0x4c] ss:$16 sps:$4 sm:$0xff]   ;;  %v781_v11 = vld [vmem:[%s1013_s1 + $0x40] ss:$16 sps:$4 sm:$0xff]   ;;  %v782_v12 = vld [vmem:[%s1013_s1 + $0x48] ss:$16 sps:$4 sm:$0xff]  }
   0x5   :  { %v783_v13 = vld [vmem:[%s1013_s1 + $0x64] ss:$16 sps:$4 sm:$0xff]   ;;  %v785_v14 = vld [vmem:[%s1013_s1 + $0x6c] ss:$16 sps:$4 sm:$0xff]   ;;  %v787_v15 = vld [vmem:[%s1013_s1 + $0x60] ss:$16 sps:$4 sm:$0xff]  }
   0x6   :  { %v788_v16 = vld [vmem:[%s1013_s1 + $0x68] ss:$16 sps:$4 sm:$0xff]   ;;  %v24_v17 = vld [vmem:[%s1012_s0] sm:$0xff] }
   0x7   :  { %172 = vmatpush1.bf16.msra.mxu0 %v775_v7  ;;  %285 = vmatpush1.bf16.msra.mxu1 %v776_v8  ;;  %v25_v18 = vld [vmem:[%s1012_s0 + $0x8] sm:$0xff] }
   0x8   :  { %173 = vmatprep.subr.bf16.mxu0 %v777_v9  ;;  %286 = vmatprep.subr.bf16.mxu1 %v779_v10  ;;  %v40_v19 = vpack.c.bf16 %v25_v18, %v24_v17 }
   0xb   :  { %174 = vmatpush1.bf16.msra.mxu0 %v781_v11  ;;  %287 = vmatpush1.bf16.msra.mxu1 %v782_v12 }
   0xc   :  { %175 = vmatprep.subr.bf16.mxu0 %v783_v13  ;;  %288 = vmatprep.subr.bf16.mxu1 %v785_v14 }
   0xf   :  { %176 = vmatpush1.bf16.msra.mxu0 %v787_v15  ;;  %289 = vmatpush1.bf16.msra.mxu1 %v788_v16 }
  0x10   :  { %9 = vsyncpa [#allocation3], 0  ;;  %v26_v20 = vld [vmem:[%s1012_s0 + $0x10] sm:$0xff]  ;;  %v27_v21 = vld [vmem:[%s1012_s0 + $0x18] sm:$0xff]  ;;  %v816_v41 = vmov 0.0   ;;  %s818_s28 = smov [#allocation2]  }
  0x11   :  { %v41_v22 = vpack.c.bf16 %v27_v21, %v26_v20  ;;  %v28_v23 = vld [vmem:[%s1012_s0 + $0x20] sm:$0xff]  ;;  %v29_v24 = vld [vmem:[%s1012_s0 + $0x28] sm:$0xff]  ;;  %v30_v26 = vld [vmem:[%s1012_s0 + $0x30] sm:$0xff]  ;;  %23 = vst [vmem:[#allocation2] sm:$0xff] %v816_v41  ;;  %s721_s29 = sshll.u32 %s818_s28, 4  ;;  %s722_s29 = int_to_ptr.vmem [resolvable:$true] %s721_s29 }
  0x12   :  { %745 = vmatmul.mubr.msk.bf16.vlgmr.msra.gmra.mrb[0].mxu0 %vm144_vm0, %v40_v19  ;;  %753 = vmatmul.mubr.msk.bf16.vlgmr.msra.gmra.mrb[0].mxu1 %vm144_vm0, %v40_v19  ;;  %v42_v25 = vpack.c.bf16 %v29_v24, %v28_v23  ;;  %v31_v27 = vld [vmem:[%s1012_s0 + $0x38] sm:$0xff]  ;;  %v32_v29 = vld [vmem:[%s1012_s0 + $0x40] sm:$0xff]  ;;  %v33_v30 = vld [vmem:[%s1012_s0 + $0x48] sm:$0xff]  ;;  %s791_s30 = scalar_lea.vmem %s722_s29, 128  ;;  %p796_p1 = scmp.lt.s32.totalorder %s722_s29, %s722_s29 }
  0x13   :  { %211 = vmatprep.mubr.bf16.mxu0 %v815_v2  ;;  %324 = vmatprep.mubr.bf16.mxu1 %v815_v2  ;;  %v43_v28 = vpack.c.bf16 %v31_v27, %v30_v26  ;;  %v44_v31 = vpack.c.bf16 %v33_v30, %v32_v29  ;;  %v34_v32 = vld [vmem:[%s1012_s0 + $0x50] sm:$0xff]  ;;  %v35_v33 = vld [vmem:[%s1012_s0 + $0x58] sm:$0xff]  ;;  %v36_v35 = vld [vmem:[%s1012_s0 + $0x60] sm:$0xff]  ;;  %p792_p0 = scmp.ne.s32.totalorder %s722_s29, %s791_s30  ;;  %p797_p2 = scmp.lt.s32.totalorder %s791_s30, %s791_s30 }
  0x14   :  { %v45_v34 = vpack.c.bf16 %v35_v33, %v34_v32  ;;  %v37_v36 = vld [vmem:[%s1012_s0 + $0x68] sm:$0xff]  ;;  %v38_v38 = vld [vmem:[%s1012_s0 + $0x70] sm:$0xff]  ;;  %v39_v39 = vld [vmem:[%s1012_s0 + $0x78] sm:$0xff] }
  0x15   :  { %v46_v37 = vpack.c.bf16 %v37_v36, %v36_v35  ;;  %v47_v40 = vpack.c.bf16 %v39_v39, %v38_v38  ;;  %p798_p3 = por %p797_p2, %p796_p1 }
  0x17   :  { %p799_p4 = pnand %p798_p3, %p792_p0 }
  0x1a   :  { %746 = vmatmul.mubr.msk.bf16.gmra.mrb[4].mxu0 %vm144_vm0, %v41_v22  ;;  %754 = vmatmul.mubr.msk.bf16.gmra.mrb[4].mxu1 %vm144_vm0, %v41_v22 }
  0x1b   :  { %221 = vmatprep.mubr.bf16.mxu0 %v815_v2  ;;  %334 = vmatprep.mubr.bf16.mxu1 %v815_v2 }
  0x22   :  { %747 = vmatmul.mubr.msk.bf16.gmra.mrb[8].mxu0 %vm144_vm0, %v42_v25  ;;  %755 = vmatmul.mubr.msk.bf16.gmra.mrb[8].mxu1 %vm144_vm0, %v42_v25 }
  0x23   :  { %231 = vmatprep.mubr.bf16.mxu0 %v815_v2  ;;  %344 = vmatprep.mubr.bf16.mxu1 %v815_v2 }
  0x2a   :  { %748 = vmatmul.mubr.msk.bf16.gmra.mrb[12].mxu0 %vm144_vm0, %v43_v28  ;;  %756 = vmatmul.mubr.msk.bf16.gmra.mrb[12].mxu1 %vm144_vm0, %v43_v28 }
  0x2b   :  { %241 = vmatprep.mubr.bf16.mxu0 %v815_v2  ;;  %354 = vmatprep.mubr.bf16.mxu1 %v815_v2 }
  0x32   :  { %749 = vmatmul.mubr.msk.bf16.gmra.mrb[16].mxu0 %vm144_vm0, %v44_v31  ;;  %757 = vmatmul.mubr.msk.bf16.gmra.mrb[16].mxu1 %vm144_vm0, %v44_v31 }
  0x33   :  { %251 = vmatprep.mubr.bf16.mxu0 %v815_v2  ;;  %364 = vmatprep.mubr.bf16.mxu1 %v815_v2 }
  0x3a   :  { %750 = vmatmul.mubr.msk.bf16.gmra.mrb[20].mxu0 %vm144_vm0, %v45_v34  ;;  %758 = vmatmul.mubr.msk.bf16.gmra.mrb[20].mxu1 %vm144_vm0, %v45_v34 }
  0x3b   :  { %261 = vmatprep.mubr.bf16.mxu0 %v815_v2  ;;  %374 = vmatprep.mubr.bf16.mxu1 %v815_v2 }
  0x42   :  { %751 = vmatmul.mubr.msk.bf16.gmra.mrb[24].mxu0 %vm144_vm0, %v46_v37  ;;  %759 = vmatmul.mubr.msk.bf16.gmra.mrb[24].mxu1 %vm144_vm0, %v46_v37 }
  0x43   :  { %271 = vmatprep.mubr.bf16.mxu0 %v815_v2  ;;  %384 = vmatprep.mubr.bf16.mxu1 %v815_v2 }
  0x4a   :  { %752 = vmatmul.mubr.msk.bf16.gmra.mrb[28].mxu0 %vm144_vm0, %v47_v40  ;;  %760 = vmatmul.mubr.msk.bf16.gmra.mrb[28].mxu1 %vm144_vm0, %v47_v40 }
  0xe5   :  { %v203_v42 = vpop.f32.mrb[0].mxu0  ;;  %v316_v43 = vpop.f32.mrb[0].mxu1 }
  0xe6   :  { %v205_v44 = vpop.f32.mrb[1].mxu0  ;;  %v318_v45 = vpop.f32.mrb[1].mxu1  ;;  %v517_v46 = vmul.f32 %v203_v42, %v203_v42  ;;  %v519_v47 = vmul.f32 %v316_v43, %v316_v43 }
  0xe7   :  { %v518_v48 = vmul.f32 %v205_v44, %v205_v44  ;;  %v520_v49 = vmul.f32 %v318_v45, %v318_v45  ;;  %v207_v50 = vpop.f32.mrb[2].mxu0  ;;  %v320_v51 = vpop.f32.mrb[2].mxu1 }
  0xe8   :  { %v396_v52 = vadd.f32 %v207_v50, %v203_v42  ;;  %v521_v53 = vmul.f32 %v207_v50, %v207_v50  ;;  %v438_v54 = vadd.f32 %v320_v51, %v316_v43  ;;  %v523_v55 = vmul.f32 %v320_v51, %v320_v51  ;;  %v209_v56 = vpop.f32.mrb[3].mxu0  ;;  %v322_v57 = vpop.f32.mrb[3].mxu1 }
  0xe9   :  { %v417_v58 = vadd.f32 %v209_v56, %v205_v44  ;;  %v522_v59 = vmul.f32 %v209_v56, %v209_v56  ;;  %v459_v60 = vadd.f32 %v322_v57, %v318_v45  ;;  %v524_v61 = vmul.f32 %v322_v57, %v322_v57 }
  0xea   :  { %v581_v62 = vadd.f32 %v521_v53, %v517_v46  ;;  %v623_v63 = vadd.f32 %v523_v55, %v519_v47 }
  0xeb   :  { %v602_v0 = vadd.f32 %v522_v59, %v518_v48  ;;  %v644_v1 = vadd.f32 %v524_v61, %v520_v49 }
  0xed   :  { %v213_v2 = vpop.f32.mrb[4].mxu0  ;;  %v326_v3 = vpop.f32.mrb[4].mxu1 }
  0xee   :  { %v397_v4 = vadd.f32 %v396_v52, %v213_v2  ;;  %v525_v5 = vmul.f32 %v213_v2, %v213_v2  ;;  %v439_v6 = vadd.f32 %v438_v54, %v326_v3  ;;  %v527_v7 = vmul.f32 %v326_v3, %v326_v3  ;;  %v215_v8 = vpop.f32.mrb[5].mxu0  ;;  %v328_v9 = vpop.f32.mrb[5].mxu1 }
  0xef   :  { %v418_v10 = vadd.f32 %v417_v58, %v215_v8  ;;  %v526_v11 = vmul.f32 %v215_v8, %v215_v8  ;;  %v460_v12 = vadd.f32 %v459_v60, %v328_v9  ;;  %v528_v13 = vmul.f32 %v328_v9, %v328_v9  ;;  %v217_v14 = vpop.f32.mrb[6].mxu0  ;;  %v330_v15 = vpop.f32.mrb[6].mxu1 }
  0xf0   :  { %v582_v16 = vadd.f32 %v581_v62, %v525_v5  ;;  %v624_v17 = vadd.f32 %v623_v63, %v527_v7  ;;  %v398_v18 = vadd.f32 %v397_v4, %v217_v14  ;;  %v529_v19 = vmul.f32 %v217_v14, %v217_v14  ;;  %v219_v20 = vpop.f32.mrb[7].mxu0  ;;  %v332_v21 = vpop.f32.mrb[7].mxu1 }
  0xf1   :  { %v603_v22 = vadd.f32 %v602_v0, %v526_v11  ;;  %v645_v23 = vadd.f32 %v644_v1, %v528_v13  ;;  %v440_v24 = vadd.f32 %v439_v6, %v330_v15  ;;  %v531_v25 = vmul.f32 %v330_v15, %v330_v15 }
  0xf2   :  { %v583_v26 = vadd.f32 %v582_v16, %v529_v19  ;;  %v419_v27 = vadd.f32 %v418_v10, %v219_v20  ;;  %v530_v28 = vmul.f32 %v219_v20, %v219_v20  ;;  %v461_v29 = vadd.f32 %v460_v12, %v332_v21 }
  0xf3   :  { %v625_v30 = vadd.f32 %v624_v17, %v531_v25  ;;  %v532_v31 = vmul.f32 %v332_v21, %v332_v21 }
  0xf4   :  { %v604_v32 = vadd.f32 %v603_v22, %v530_v28 }
  0xf5   :  { %v646_v33 = vadd.f32 %v645_v23, %v532_v31  ;;  %v223_v34 = vpop.f32.mrb[8].mxu0  ;;  %v336_v35 = vpop.f32.mrb[8].mxu1 }
  0xf6   :  { %v399_v36 = vadd.f32 %v398_v18, %v223_v34  ;;  %v533_v37 = vmul.f32 %v223_v34, %v223_v34  ;;  %v441_v38 = vadd.f32 %v440_v24, %v336_v35  ;;  %v535_v39 = vmul.f32 %v336_v35, %v336_v35  ;;  %v225_v40 = vpop.f32.mrb[9].mxu0  ;;  %v338_v41 = vpop.f32.mrb[9].mxu1 }
  0xf7   :  { %v420_v42 = vadd.f32 %v419_v27, %v225_v40  ;;  %v534_v43 = vmul.f32 %v225_v40, %v225_v40  ;;  %v462_v44 = vadd.f32 %v461_v29, %v338_v41  ;;  %v536_v45 = vmul.f32 %v338_v41, %v338_v41  ;;  %v227_v46 = vpop.f32.mrb[10].mxu0  ;;  %v340_v47 = vpop.f32.mrb[10].mxu1 }
  0xf8   :  { %v584_v48 = vadd.f32 %v583_v26, %v533_v37  ;;  %v626_v49 = vadd.f32 %v625_v30, %v535_v39  ;;  %v400_v50 = vadd.f32 %v399_v36, %v227_v46  ;;  %v537_v51 = vmul.f32 %v227_v46, %v227_v46  ;;  %v229_v52 = vpop.f32.mrb[11].mxu0  ;;  %v342_v53 = vpop.f32.mrb[11].mxu1 }
  0xf9   :  { %v605_v54 = vadd.f32 %v604_v32, %v534_v43  ;;  %v647_v55 = vadd.f32 %v646_v33, %v536_v45  ;;  %v442_v56 = vadd.f32 %v441_v38, %v340_v47  ;;  %v539_v57 = vmul.f32 %v340_v47, %v340_v47 }
  0xfa   :  { %v585_v58 = vadd.f32 %v584_v48, %v537_v51  ;;  %v421_v59 = vadd.f32 %v420_v42, %v229_v52  ;;  %v538_v60 = vmul.f32 %v229_v52, %v229_v52  ;;  %v463_v61 = vadd.f32 %v462_v44, %v342_v53 }
  0xfb   :  { %v627_v62 = vadd.f32 %v626_v49, %v539_v57  ;;  %v540_v63 = vmul.f32 %v342_v53, %v342_v53 }
  0xfc   :  { %v606_v0 = vadd.f32 %v605_v54, %v538_v60 }
  0xfd   :  { %v648_v1 = vadd.f32 %v647_v55, %v540_v63  ;;  %v233_v2 = vpop.f32.mrb[12].mxu0  ;;  %v346_v3 = vpop.f32.mrb[12].mxu1 }
  0xfe   :  { %v401_v4 = vadd.f32 %v400_v50, %v233_v2  ;;  %v541_v5 = vmul.f32 %v233_v2, %v233_v2  ;;  %v443_v6 = vadd.f32 %v442_v56, %v346_v3  ;;  %v543_v7 = vmul.f32 %v346_v3, %v346_v3  ;;  %v235_v8 = vpop.f32.mrb[13].mxu0  ;;  %v348_v9 = vpop.f32.mrb[13].mxu1 }
  0xff   :  { %v422_v10 = vadd.f32 %v421_v59, %v235_v8  ;;  %v542_v11 = vmul.f32 %v235_v8, %v235_v8  ;;  %v464_v12 = vadd.f32 %v463_v61, %v348_v9  ;;  %v544_v13 = vmul.f32 %v348_v9, %v348_v9  ;;  %v237_v14 = vpop.f32.mrb[14].mxu0  ;;  %v350_v15 = vpop.f32.mrb[14].mxu1 }
 0x100   :  { %v586_v16 = vadd.f32 %v585_v58, %v541_v5  ;;  %v628_v17 = vadd.f32 %v627_v62, %v543_v7  ;;  %v402_v18 = vadd.f32 %v401_v4, %v237_v14  ;;  %v545_v19 = vmul.f32 %v237_v14, %v237_v14  ;;  %v239_v20 = vpop.f32.mrb[15].mxu0  ;;  %v352_v21 = vpop.f32.mrb[15].mxu1 }
 0x101   :  { %v607_v22 = vadd.f32 %v606_v0, %v542_v11  ;;  %v649_v23 = vadd.f32 %v648_v1, %v544_v13  ;;  %v444_v24 = vadd.f32 %v443_v6, %v350_v15  ;;  %v547_v25 = vmul.f32 %v350_v15, %v350_v15 }
 0x102   :  { %v587_v26 = vadd.f32 %v586_v16, %v545_v19  ;;  %v423_v27 = vadd.f32 %v422_v10, %v239_v20  ;;  %v546_v28 = vmul.f32 %v239_v20, %v239_v20  ;;  %v465_v29 = vadd.f32 %v464_v12, %v352_v21 }
 0x103   :  { %v629_v30 = vadd.f32 %v628_v17, %v547_v25  ;;  %v548_v31 = vmul.f32 %v352_v21, %v352_v21 }
 0x104   :  { %v608_v32 = vadd.f32 %v607_v22, %v546_v28 }
 0x105   :  { %v650_v33 = vadd.f32 %v649_v23, %v548_v31  ;;  %v243_v34 = vpop.f32.mrb[16].mxu0  ;;  %v356_v35 = vpop.f32.mrb[16].mxu1 }
 0x106   :  { %v403_v36 = vadd.f32 %v402_v18, %v243_v34  ;;  %v549_v37 = vmul.f32 %v243_v34, %v243_v34  ;;  %v445_v38 = vadd.f32 %v444_v24, %v356_v35  ;;  %v551_v39 = vmul.f32 %v356_v35, %v356_v35  ;;  %v245_v40 = vpop.f32.mrb[17].mxu0  ;;  %v358_v41 = vpop.f32.mrb[17].mxu1 }
 0x107   :  { %v424_v42 = vadd.f32 %v423_v27, %v245_v40  ;;  %v550_v43 = vmul.f32 %v245_v40, %v245_v40  ;;  %v466_v44 = vadd.f32 %v465_v29, %v358_v41  ;;  %v552_v45 = vmul.f32 %v358_v41, %v358_v41  ;;  %v247_v46 = vpop.f32.mrb[18].mxu0  ;;  %v360_v47 = vpop.f32.mrb[18].mxu1 }
 0x108   :  { %v588_v48 = vadd.f32 %v587_v26, %v549_v37  ;;  %v630_v49 = vadd.f32 %v629_v30, %v551_v39  ;;  %v404_v50 = vadd.f32 %v403_v36, %v247_v46  ;;  %v553_v51 = vmul.f32 %v247_v46, %v247_v46  ;;  %v249_v52 = vpop.f32.mrb[19].mxu0  ;;  %v362_v53 = vpop.f32.mrb[19].mxu1 }
 0x109   :  { %v609_v54 = vadd.f32 %v608_v32, %v550_v43  ;;  %v651_v55 = vadd.f32 %v650_v33, %v552_v45  ;;  %v446_v56 = vadd.f32 %v445_v38, %v360_v47  ;;  %v555_v57 = vmul.f32 %v360_v47, %v360_v47 }
 0x10a   :  { %v589_v58 = vadd.f32 %v588_v48, %v553_v51  ;;  %v425_v59 = vadd.f32 %v424_v42, %v249_v52  ;;  %v554_v60 = vmul.f32 %v249_v52, %v249_v52  ;;  %v467_v61 = vadd.f32 %v466_v44, %v362_v53 }
 0x10b   :  { %v631_v62 = vadd.f32 %v630_v49, %v555_v57  ;;  %v556_v63 = vmul.f32 %v362_v53, %v362_v53  ;;  %v817_v36 = vmov 1966171168   ;;  %v489_v38 = vlaneseq }
 0x10c   :  { %v610_v0 = vadd.f32 %v609_v54, %v554_v60  ;;  %v972_v37 = vunpack.c.l.s4 %v817_v36 }
 0x10d   :  { %v652_v1 = vadd.f32 %v651_v55, %v556_v63  ;;  %v253_v2 = vpop.f32.mrb[20].mxu0  ;;  %v366_v3 = vpop.f32.mrb[20].mxu1  ;;  %vm982_vm1 = vcmp.lt.s32.totalorder %v489_v38, 512 }
 0x10e   :  { %v405_v4 = vadd.f32 %v404_v50, %v253_v2  ;;  %v557_v5 = vmul.f32 %v253_v2, %v253_v2  ;;  %v447_v6 = vadd.f32 %v446_v56, %v366_v3  ;;  %v559_v7 = vmul.f32 %v366_v3, %v366_v3  ;;  %v255_v8 = vpop.f32.mrb[21].mxu0  ;;  %v368_v9 = vpop.f32.mrb[21].mxu1 }
 0x10f   :  { %v426_v10 = vadd.f32 %v425_v59, %v255_v8  ;;  %v558_v11 = vmul.f32 %v255_v8, %v255_v8  ;;  %v468_v12 = vadd.f32 %v467_v61, %v368_v9  ;;  %v560_v13 = vmul.f32 %v368_v9, %v368_v9  ;;  %v257_v14 = vpop.f32.mrb[22].mxu0  ;;  %v370_v15 = vpop.f32.mrb[22].mxu1 }
 0x110   :  { %v590_v16 = vadd.f32 %v589_v58, %v557_v5  ;;  %v632_v17 = vadd.f32 %v631_v62, %v559_v7  ;;  %v406_v18 = vadd.f32 %v405_v4, %v257_v14  ;;  %v561_v19 = vmul.f32 %v257_v14, %v257_v14  ;;  %v259_v20 = vpop.f32.mrb[23].mxu0  ;;  %v372_v21 = vpop.f32.mrb[23].mxu1 }
 0x111   :  { %v611_v22 = vadd.f32 %v610_v0, %v558_v11  ;;  %v653_v23 = vadd.f32 %v652_v1, %v560_v13  ;;  %v448_v24 = vadd.f32 %v447_v6, %v370_v15  ;;  %v563_v25 = vmul.f32 %v370_v15, %v370_v15 }
 0x112   :  { %v591_v26 = vadd.f32 %v590_v16, %v561_v19  ;;  %v427_v27 = vadd.f32 %v426_v10, %v259_v20  ;;  %v562_v28 = vmul.f32 %v259_v20, %v259_v20  ;;  %v469_v29 = vadd.f32 %v468_v12, %v372_v21 }
 0x113   :  { %v633_v30 = vadd.f32 %v632_v17, %v563_v25  ;;  %v564_v31 = vmul.f32 %v372_v21, %v372_v21  ;;  %v488_v7 = vunpack.c.0.s8 %v972_v37  ;;  %v976_v8 = vshrl.u32 %v489_v38, 7 }
 0x114   :  { %v612_v32 = vadd.f32 %v611_v22, %v562_v28 }
 0x115   :  { %v654_v33 = vadd.f32 %v653_v23, %v564_v31  ;;  %v263_v34 = vpop.f32.mrb[24].mxu0  ;;  %v376_v35 = vpop.f32.mrb[24].mxu1 }
 0x116   :  { %v407_v39 = vadd.f32 %v406_v18, %v263_v34  ;;  %v565_v40 = vmul.f32 %v263_v34, %v263_v34  ;;  %v449_v41 = vadd.f32 %v448_v24, %v376_v35  ;;  %v567_v42 = vmul.f32 %v376_v35, %v376_v35  ;;  %v265_v43 = vpop.f32.mrb[25].mxu0  ;;  %v378_v44 = vpop.f32.mrb[25].mxu1 }
 0x117   :  { %v428_v45 = vadd.f32 %v427_v27, %v265_v43  ;;  %v566_v46 = vmul.f32 %v265_v43, %v265_v43  ;;  %v470_v47 = vadd.f32 %v469_v29, %v378_v44  ;;  %v568_v48 = vmul.f32 %v378_v44, %v378_v44  ;;  %v267_v49 = vpop.f32.mrb[26].mxu0  ;;  %v380_v50 = vpop.f32.mrb[26].mxu1 }
 0x118   :  { %v592_v51 = vadd.f32 %v591_v26, %v565_v40  ;;  %v634_v52 = vadd.f32 %v633_v30, %v567_v42  ;;  %v408_v53 = vadd.f32 %v407_v39, %v267_v49  ;;  %v569_v54 = vmul.f32 %v267_v49, %v267_v49  ;;  %v269_v55 = vpop.f32.mrb[27].mxu0  ;;  %v382_v56 = vpop.f32.mrb[27].mxu1 }
 0x119   :  { %v613_v57 = vadd.f32 %v612_v32, %v566_v46  ;;  %v655_v58 = vadd.f32 %v654_v33, %v568_v48  ;;  %v450_v59 = vadd.f32 %v449_v41, %v380_v50  ;;  %v571_v60 = vmul.f32 %v380_v50, %v380_v50 }
 0x11a   :  { %v593_v61 = vadd.f32 %v592_v51, %v569_v54  ;;  %v429_v62 = vadd.f32 %v428_v45, %v269_v55  ;;  %v570_v63 = vmul.f32 %v269_v55, %v269_v55  ;;  %v471_v0 = vadd.f32 %v470_v47, %v382_v56 }
 0x11b   :  { %v635_v1 = vadd.f32 %v634_v52, %v571_v60  ;;  %v572_v2 = vmul.f32 %v382_v56, %v382_v56 }
 0x11c   :  { %v614_v3 = vadd.f32 %v613_v57, %v570_v63 }
 0x11d   :  { %v656_v4 = vadd.f32 %v655_v58, %v572_v2  ;;  %v273_v5 = vpop.f32.mrb[28].mxu0  ;;  %v386_v6 = vpop.f32.mrb[28].mxu1 }
 0x11e   :  { %v409_v9 = vadd.f32 %v408_v53, %v273_v5  ;;  %v573_v10 = vmul.f32 %v273_v5, %v273_v5  ;;  %v451_v11 = vadd.f32 %v450_v59, %v386_v6  ;;  %v575_v12 = vmul.f32 %v386_v6, %v386_v6  ;;  %v275_v13 = vpop.f32.mrb[29].mxu0  ;;  %v388_v14 = vpop.f32.mrb[29].mxu1 }
 0x11f   :  { %v430_v15 = vadd.f32 %v429_v62, %v275_v13  ;;  %v574_v16 = vmul.f32 %v275_v13, %v275_v13  ;;  %v472_v17 = vadd.f32 %v471_v0, %v388_v14  ;;  %v576_v18 = vmul.f32 %v388_v14, %v388_v14  ;;  %v277_v19 = vpop.f32.mrb[30].mxu0  ;;  %v390_v20 = vpop.f32.mrb[30].mxu1 }
 0x120   :  { %v594_v21 = vadd.f32 %v593_v61, %v573_v10  ;;  %v636_v22 = vadd.f32 %v635_v1, %v575_v12  ;;  %v410_v23 = vadd.f32 %v409_v9, %v277_v19  ;;  %v577_v24 = vmul.f32 %v277_v19, %v277_v19  ;;  %v279_v25 = vpop.f32.mrb[31].mxu0  ;;  %v392_v26 = vpop.f32.mrb[31].mxu1 }
 0x121   :  { %v615_v27 = vadd.f32 %v614_v3, %v574_v16  ;;  %v657_v28 = vadd.f32 %v656_v4, %v576_v18  ;;  %v452_v29 = vadd.f32 %v451_v11, %v390_v20  ;;  %v579_v30 = vmul.f32 %v390_v20, %v390_v20 }
 0x122   :  { %v411_v31 = vrot.slane %v410_v23, 4  ;;  %v595_v32 = vadd.f32 %v594_v21, %v577_v24  ;;  %v431_v33 = vadd.f32 %v430_v15, %v279_v25  ;;  %v578_v34 = vmul.f32 %v279_v25, %v279_v25 }
 0x123   :  { %v453_v35 = vrot.slane %v452_v29, 4  ;;  %v637_v36 = vadd.f32 %v636_v22, %v579_v30  ;;  %v473_v39 = vadd.f32 %v472_v17, %v392_v26  ;;  %v580_v40 = vmul.f32 %v392_v26, %v392_v26 }
 0x124   :  { %v412_v41 = vadd.f32 %v411_v31, %v410_v23  ;;  %v596_v42 = vrot.slane %v595_v32, 4  ;;  %v432_v43 = vrot.slane %v431_v33, 4  ;;  %v616_v44 = vadd.f32 %v615_v27, %v578_v34 }
 0x125   :  { %v454_v45 = vadd.f32 %v453_v35, %v452_v29  ;;  %v638_v46 = vrot.slane %v637_v36, 4  ;;  %v474_v47 = vrot.slane %v473_v39, 4  ;;  %v658_v48 = vadd.f32 %v657_v28, %v580_v40 }
 0x126   :  { %v413_v49 = vrot.slane %v412_v41, 2  ;;  %v597_v50 = vadd.f32 %v596_v42, %v595_v32  ;;  %v433_v51 = vadd.f32 %v432_v43, %v431_v33  ;;  %v617_v52 = vrot.slane %v616_v44, 4 }
 0x127   :  { %v455_v53 = vrot.slane %v454_v45, 2  ;;  %v639_v54 = vadd.f32 %v638_v46, %v637_v36  ;;  %v475_v55 = vadd.f32 %v474_v47, %v473_v39  ;;  %v659_v56 = vrot.slane %v658_v48, 4  ;;  %v395_v39 = vld [vmem:[#allocation2] ss:$2 sm:$0xf] }
 0x128   :  { %v414_v57 = vadd.f32 %v413_v49, %v412_v41  ;;  %v598_v58 = vrot.slane %v597_v50, 2  ;;  %v434_v59 = vrot.slane %v433_v51, 2  ;;  %v618_v60 = vadd.f32 %v617_v52, %v616_v44 }
 0x129   :  { %v456_v61 = vadd.f32 %v455_v53, %v454_v45  ;;  %v640_v62 = vrot.slane %v639_v54, 2  ;;  %v476_v63 = vrot.slane %v475_v55, 2  ;;  %v660_v0 = vadd.f32 %v659_v56, %v658_v48 }
 0x12a   :  { %v415_v1 = vrot.slane %v414_v57, 1  ;;  %v599_v2 = vadd.f32 %v598_v58, %v597_v50  ;;  %v435_v3 = vadd.f32 %v434_v59, %v433_v51  ;;  %v619_v4 = vrot.slane %v618_v60, 2  ;;  %v706_v51 = vld [vmem:[%s1014_s2] sm:$0xf] }
 0x12b   :  { %v457_v5 = vrot.slane %v456_v61, 1  ;;  %v641_v6 = vadd.f32 %v640_v62, %v639_v54  ;;  %v477_v9 = vadd.f32 %v476_v63, %v475_v55  ;;  %v661_v10 = vrot.slane %v660_v0, 2  ;;  %v710_v54 = vld [vmem:[%s1015_s3] sm:$0xf] }
 0x12c   :  { %v416_v11 = vadd.f32 %v415_v1, %v414_v57  ;;  %v600_v12 = vrot.slane %v599_v2, 1  ;;  %v436_v13 = vrot.slane %v435_v3, 1  ;;  %v620_v14 = vadd.f32 %v619_v4, %v618_v60 }
 0x12d   :  { %v458_v15 = vadd.f32 %v457_v5, %v456_v61  ;;  %v642_v16 = vrot.slane %v641_v6, 1  ;;  %v478_v17 = vrot.slane %v477_v9, 1  ;;  %v662_v18 = vadd.f32 %v661_v10, %v660_v0 }
 0x12e   :  { %v601_v19 = vadd.f32 %v600_v12, %v599_v2  ;;  %v437_v20 = vadd.f32 %v436_v13, %v435_v3  ;;  %v491_v21 = vsub.s32 %v488_v7, %v976_v8  ;;  %v621_v22 = vrot.slane %v620_v14, 1  ;;  %v516_v7 = vld [vmem:[#allocation2 + $0x1] ss:$2 sm:$0xf] }
 0x12f   :  { %v643_v23 = vadd.f32 %v642_v16, %v641_v6  ;;  %v479_v24 = vadd.f32 %v478_v17, %v477_v9  ;;  %v663_v25 = vrot.slane %v662_v18, 1 }
 0x130   :  { %v484_v26 = vcombine.low %v416_v11, %v437_v20  ;;  %v622_v27 = vadd.f32 %v621_v22, %v620_v14 }
 0x131   :  { %v485_v28 = vcombine.low %v458_v15, %v479_v24  ;;  %v664_v29 = vadd.f32 %v663_v25, %v662_v18 }
 0x132   :  { %v492_v30 = vrot.slane %v484_v26, %v491_v21  ;;  %v669_v31 = vcombine.low %v601_v19, %v622_v27 }
 0x133   :  { %v499_v32 = vrot.slane %v485_v28, %v491_v21  ;;  %v670_v33 = vcombine.low %v643_v23, %v664_v29 }
 0x134   :  { %v677_v34 = vrot.slane %v669_v31, %v491_v21 }
 0x135   :  { %v500_v35 = vcombine.low %v492_v30, %v499_v32  ;;  %v684_v36 = vrot.slane %v670_v33, %v491_v21 }
 0x137   :  { %v685_v40 = vcombine.low %v677_v34, %v684_v36  ;;  %v507_v41 = vrot.slane %v500_v35, %v491_v21 }
 0x139   :  { %v509_v8 = vadd.f32 %v507_v41, %v395_v39  ;;  %v692_v42 = vrot.slane %v685_v40, %v491_v21 }
 0x13b   :  { %514 = vst.msk [vmem:[#allocation2] ss:$2 sm:$0xf] %vm982_vm1, %v509_v8  ;;  %v694_v43 = vadd.f32 %v692_v42, %v516_v7 }
 0x13d   :  { %695 = vst.msk [vmem:[#allocation2 + $0x1] ss:$2 sm:$0xf] %vm982_vm1, %v694_v43 }
 0x142   :  { %v699_v44 = vld [vmem:[#allocation2] ss:$2 sm:$0xf] }
 0x143   :  { %v700_v45 = vmul.f32 0.0078125, %v699_v44 }
 0x144   :  { %v701_v46 = vld [vmem:[#allocation2 + $0x1] ss:$2 sm:$0xf] }
 0x145   :  { %v702_v47 = vmul.f32 0.0078125, %v701_v46  ;;  %v703_v48 = vmul.f32 %v700_v45, %v700_v45 }
 0x147   :  { %v704_v49 = vsub.f32 %v702_v47, %v703_v48 }
 0x149   :  { %v705_v38 = vmax.f32 %v704_v49, 0.0 }
 0x14b   :  { %v707_v50 = vadd.f32 1e-05, %v705_v38 }
 0x14d   :  { %789 = vrsqrt.f32 %v707_v50 }
 0x157   :  { %v790_v52 = vpop.eup %789 }
 0x158   :  { %v709_v53 = vmul.f32 %v790_v52, %v706_v51 }
 0x15a   :  { %v711_v55 = vmul.f32 %v709_v53, %v700_v45  ;;  %713 = vst.msk [vmem:[#allocation2] ss:$2 sm:$0xf] %vm982_vm1, %v709_v53 }
 0x15c   :  { %v712_v56 = vsub.f32 %v710_v54, %v711_v55 }
 0x15e   :  { %714 = vst.msk [vmem:[#allocation2 + $0x1] ss:$2 sm:$0xf] %vm982_vm1, %v712_v56 }
 0x15f   :  { %802 = shalt.err (!%p799_p4)
}
 0x160   :  { %s803_s5 = scalar_lea.hbm %s1016_s4, 128 }
 0x161   :  { %p804_p5 = scmp.ne.s32.totalorder %s1016_s4, %s803_s5  ;;  %p807_p6 = scmp.lt.u32.totalorder %s803_s5, %s1016_s4 }
 0x163   :  { %p809_p7 = pnand %p807_p6, %p804_p5 }
 0x165   :  { %812 = shalt.err (!%p809_p7)
}
 0x166   :  { %724 = dma.vmem_to_hbm [thread:$0]  %s722_s29, 128, %s1016_s4, [#allocation3]  }
 0x167   :  { %813 = dma.done.wait [#allocation3], 128  }
 0x168   :  { %814 = vsyncadd [#allocation3], 4294967168 }
 0x169   :  { %728 = vsyncpa [#allocation3], 1 }

</bundles_post_ra>
